<compile_context>
chip_gen: v5e
topology: v5e:2x2
jax: 0.10.0
libtpu: 0.0.40
codegen_flags: <defaults>
</compile_context>

<pallas_src>
import functools

import jax
import jax.numpy as jnp
from jax import lax
from jax.experimental import pallas as pl
from jax.experimental.pallas import tpu as pltpu


# ----------------------------------------------------------------------------- kernel
def intrusion_mlp_kernel(x_ref, w1_ref, b1_ref, w2_ref, b2_ref, w3_ref, b3_ref, o_ref):
    # x_ref : (tb, F)  f32 tile of the input in its native (batch, feat) layout.
    # w1_ref: (8, F)   f32, b1_ref: (8, 1) f32
    # w2_ref: (4, 8)   f32, b2_ref: (4, 1) f32      (torch (out, in) layout)
    # w3_ref: (2, 4)   f32, b3_ref: (2, 1) f32
    # o_ref : (2, tb)  f32 lane-dense output tile (feature-major).
    x = x_ref[...]                                   # (tb, F)
    w1 = w1_ref[...]                                 # (8, F)

    # ---- Layer 1 on the MXU: transposed contraction (8, F) x (tb, F)^T -> (8, tb).
    h1 = lax.dot_general(
        w1, x,
        dimension_numbers=(((1,), (1,)), ((), ())),  # contract the feature dims
        preferred_element_type=jnp.float32)
    h1 = jnp.maximum(h1 + b1_ref[...], 0.0)          # bias (8,1) broadcasts over lanes

    # ---- Layer 2 (8 -> 4): 8 unrolled VPU FMAs on (4, tb) slabs.
    w2 = w2_ref[...]                                 # (4, 8)
    acc2 = w2[:, 0:1] * h1[0:1, :]
    for k in range(1, 8):
        acc2 = acc2 + w2[:, k:k + 1] * h1[k:k + 1, :]
    h2 = jnp.maximum(acc2 + b2_ref[...], 0.0)        # (4, tb)

    # ---- Layer 3 (4 -> 2): 4 unrolled VPU FMAs on (2, tb) slabs.
    w3 = w3_ref[...]                                 # (2, 4)
    acc3 = w3[:, 0:1] * h2[0:1, :]
    for k in range(1, 4):
        acc3 = acc3 + w3[:, k:k + 1] * h2[k:k + 1, :]
    o_ref[...] = (acc3 + b3_ref[...]).astype(o_ref.dtype)   # (2, tb) lane-dense store


# ----------------------------------------------------------------------------- sizing
def _vmem_capacity_bytes():
    try:
        return int(pltpu.get_tpu_info().vmem_capacity_bytes)
    except Exception:
        return 64 * 1024 * 1024          # conservative: v7x per-TensorCore capacity


def _pick_batch_tile(batch, feat, vmem_cap):
    """Batch-tile (multiple of 128) sized against per-generation VMEM.

    Budget ~1/4 of VMEM for the double-buffered x/out tiles: ~16 MiB on v7x
    (64 MiB / TC), ~32 MiB on v5e/v6e (128 MiB).  Keep >= ~8 grid steps on large
    batches so megacore sharding and DMA pipelining have work.
    """
    budget = min(vmem_cap // 4, 32 * 1024 * 1024)
    feat_vmem = max(((feat + 127) // 128) * 128, 128)        # lane-padded VMEM width
    bytes_per_row = 4 * feat_vmem + 4 * 8                    # x row (f32) + out col (2->8 sublanes)
    tb_vmem = max((budget // (2 * bytes_per_row)) // 128 * 128, 128)
    tb_batch = ((batch + 127) // 128) * 128                  # whole batch rounded to a lane tile
    tb_split = max((((batch + 7) // 8 + 127) // 128) * 128, 128)   # aim for >= 8 grid steps
    return min(tb_vmem, tb_batch, tb_split), budget


# ----------------------------------------------------------------------------- wrapper
@jax.jit
def intrusion_nn_forward(x, params):
    """x: (batch, feat) float32. params in PyTorch layout: ((W1(8,F), b1(8,)), ...)."""
    (w1, b1), (w2, b2), (w3, b3) = params
    batch, feat = x.shape

    vmem_cap = _vmem_capacity_bytes()
    tb, budget = _pick_batch_tile(batch, feat, vmem_cap)
    grid = (pl.cdiv(batch, tb),)                     # ragged last block: masked writes
    vmem_limit = min(vmem_cap, 2 * budget + (4 << 20))

    # Parameters: torch layouts, biases as column vectors for the feature-major compute.
    w1f = w1.astype(jnp.float32)                     # (8, F)
    b1c = b1.reshape(8, 1).astype(jnp.float32)
    w2f = w2.astype(jnp.float32)                     # (4, 8)
    b2c = b2.reshape(4, 1).astype(jnp.float32)
    w3f = w3.astype(jnp.float32)                     # (2, 4)
    b3c = b3.reshape(2, 1).astype(jnp.float32)

    const = lambda i: (0, 0)                         # params fetched once, VMEM-resident
    out_t = pl.pallas_call(
        intrusion_mlp_kernel,
        out_shape=jax.ShapeDtypeStruct((2, batch), jnp.float32),
        grid=grid,
        in_specs=[
            # Stream x tiles straight from its native (batch, feat) HBM layout.
            # TODO(synk): add pipeline_mode=pl.Buffered(3) here if an xprof trace on
            # v7x shows exposed input DMA with the 64 MiB-per-TC tile sizes.
            pl.BlockSpec((tb, feat), lambda i: (i, 0)),
            pl.BlockSpec((8, feat), const),
            pl.BlockSpec((8, 1), const),
            pl.BlockSpec((4, 8), const),
            pl.BlockSpec((4, 1), const),
            pl.BlockSpec((2, 4), const),
            pl.BlockSpec((2, 1), const),
        ],
        out_specs=pl.BlockSpec((2, tb), lambda i: (0, i)),
        compiler_params=pltpu.CompilerParams(
            dimension_semantics=("parallel",),       # megacore-shard the batch axis
            vmem_limit_bytes=int(vmem_limit),
        ),
    )(x, w1f, b1c, w2f, b2c, w3f, b3c)

    # Tiny (2, batch) -> (batch, 2) transpose to match the PyTorch output layout.
    return out_t.T


# ----------------------------------------------------------------------------- reference / test
def init_params(key, input_size):
    # PyTorch-like uniform fan-in init, weights stored in torch layout (out, in).
    def linear(k, fan_in, fan_out):
        k_w, k_b = jax.random.split(k)
        bound = 1.0 / (fan_in ** 0.5)
        w = jax.random.uniform(k_w, (fan_out, fan_in), jnp.float32, -bound, bound)
        b = jax.random.uniform(k_b, (fan_out,), jnp.float32, -bound, bound)
        return w, b

    k1, k2, k3 = jax.random.split(key, 3)
    return (linear(k1, input_size, 8), linear(k2, 8, 4), linear(k3, 4, 2))


def reference_forward(x, params):
    (w1, b1), (w2, b2), (w3, b3) = params
    hp = lax.Precision.HIGHEST
    h1 = jnp.maximum(jnp.dot(x, w1.T, precision=hp) + b1, 0.0)
    h2 = jnp.maximum(jnp.dot(h1, w2.T, precision=hp) + b2, 0.0)
    return jnp.dot(h2, w3.T, precision=hp) + b3


if __name__ == "__main__":
    input_size = 32
    batch = 8

    key = jax.random.PRNGKey(0)
    k_params, k_x = jax.random.split(key)
    params = init_params(k_params, input_size)
    x = jax.random.normal(k_x, (batch, input_size), jnp.float32)

    out = intrusion_nn_forward(x, params)
    out = jax.block_until_ready(out)

    ref = reference_forward(x, params)
    assert out.shape == (batch, 2), out.shape
    # Tolerance leaves margin for the MXU's f32 pass decomposition on layer 1.
    err = float(jnp.max(jnp.abs(out - ref)))
    assert jnp.allclose(out, ref, atol=5e-3, rtol=5e-3), err

    print("KERNEL_OK")
</pallas_src>

<mosaic_0001>
module attributes {stable_mosaic.version = 11 : i64} {
  func.func @intrusion_mlp_kernel(%arg0: i32, %arg1: memref<128x32xf32, #tpu.memory_space<vmem>>, %arg2: memref<8x32xf32, #tpu.memory_space<vmem>>, %arg3: memref<8x1xf32, #tpu.memory_space<vmem>>, %arg4: memref<4x8xf32, #tpu.memory_space<vmem>>, %arg5: memref<4x1xf32, #tpu.memory_space<vmem>>, %arg6: memref<2x4xf32, #tpu.memory_space<vmem>>, %arg7: memref<2x1xf32, #tpu.memory_space<vmem>>, %arg8: memref<2x128xf32, #tpu.memory_space<vmem>>) attributes {dimension_semantics = [#tpu.dimension_semantics<parallel>], iteration_bounds = array<i64: 1>, scalar_prefetch = 0 : i64, scratch_operands = 0 : i64, tpu.core_type = #tpu.core_type<tc>, window_params = [{transform_indices = @transform_0, window_bounds = array<i64: 128, 32>}, {pipeline_mode = #tpu.pipeline_mode<synchronous>, transform_indices = @transform_1, window_bounds = array<i64: 8, 32>}, {pipeline_mode = #tpu.pipeline_mode<synchronous>, transform_indices = @transform_2, window_bounds = array<i64: 8, 1>}, {pipeline_mode = #tpu.pipeline_mode<synchronous>, transform_indices = @transform_3, window_bounds = array<i64: 4, 8>}, {pipeline_mode = #tpu.pipeline_mode<synchronous>, transform_indices = @transform_4, window_bounds = array<i64: 4, 1>}, {pipeline_mode = #tpu.pipeline_mode<synchronous>, transform_indices = @transform_5, window_bounds = array<i64: 2, 4>}, {pipeline_mode = #tpu.pipeline_mode<synchronous>, transform_indices = @transform_6, window_bounds = array<i64: 2, 1>}, {transform_indices = @transform_7, window_bounds = array<i64: 2, 128>}]} {
    %c0 = arith.constant 0 : index
    %c0_0 = arith.constant 0 : index
    %0 = vector.load %arg1[%c0, %c0_0] : memref<128x32xf32, #tpu.memory_space<vmem>>, vector<128x32xf32>
    %c0_1 = arith.constant 0 : index
    %c0_2 = arith.constant 0 : index
    %1 = vector.load %arg2[%c0_1, %c0_2] : memref<8x32xf32, #tpu.memory_space<vmem>>, vector<8x32xf32>
    %cst = arith.constant dense<0.000000e+00> : vector<8x128xf32>
    %2 = tpu.matmul %1, %0, %cst {dimension_numbers = #tpu.dot_dimension_numbers<[1], [1], [0], [0], [0, 0, 1, 0], [], []>} : vector<8x32xf32>, vector<128x32xf32>, vector<8x128xf32> -> vector<8x128xf32>
    %c0_3 = arith.constant 0 : index
    %c0_4 = arith.constant 0 : index
    %3 = vector.load %arg3[%c0_3, %c0_4] : memref<8x1xf32, #tpu.memory_space<vmem>>, vector<8x1xf32>
    %4 = vector.broadcast %3 : vector<8x1xf32> to vector<8x128xf32>
    %5 = arith.addf %2, %4 : vector<8x128xf32>
    %cst_5 = arith.constant 0.000000e+00 : f32
    %6 = vector.broadcast %cst_5 : f32 to vector<8x128xf32>
    %7 = arith.maximumf %5, %6 : vector<8x128xf32>
    %c0_6 = arith.constant 0 : index
    %c0_7 = arith.constant 0 : index
    %8 = vector.load %arg4[%c0_6, %c0_7] : memref<4x8xf32, #tpu.memory_space<vmem>>, vector<4x8xf32>
    %9 = vector.extract_strided_slice %8 {offsets = [0, 0], sizes = [4, 1], strides = [1, 1]} : vector<4x8xf32> to vector<4x1xf32>
    %10 = vector.extract_strided_slice %7 {offsets = [0, 0], sizes = [1, 128], strides = [1, 1]} : vector<8x128xf32> to vector<1x128xf32>
    %11 = vector.broadcast %9 : vector<4x1xf32> to vector<4x128xf32>
    %12 = vector.broadcast %10 : vector<1x128xf32> to vector<4x128xf32>
    %13 = arith.mulf %11, %12 : vector<4x128xf32>
    %14 = vector.extract_strided_slice %8 {offsets = [0, 1], sizes = [4, 1], strides = [1, 1]} : vector<4x8xf32> to vector<4x1xf32>
    %15 = vector.extract_strided_slice %7 {offsets = [1, 0], sizes = [1, 128], strides = [1, 1]} : vector<8x128xf32> to vector<1x128xf32>
    %16 = vector.broadcast %14 : vector<4x1xf32> to vector<4x128xf32>
    %17 = vector.broadcast %15 : vector<1x128xf32> to vector<4x128xf32>
    %18 = arith.mulf %16, %17 : vector<4x128xf32>
    %19 = arith.addf %13, %18 : vector<4x128xf32>
    %20 = vector.extract_strided_slice %8 {offsets = [0, 2], sizes = [4, 1], strides = [1, 1]} : vector<4x8xf32> to vector<4x1xf32>
    %21 = vector.extract_strided_slice %7 {offsets = [2, 0], sizes = [1, 128], strides = [1, 1]} : vector<8x128xf32> to vector<1x128xf32>
    %22 = vector.broadcast %20 : vector<4x1xf32> to vector<4x128xf32>
    %23 = vector.broadcast %21 : vector<1x128xf32> to vector<4x128xf32>
    %24 = arith.mulf %22, %23 : vector<4x128xf32>
    %25 = arith.addf %19, %24 : vector<4x128xf32>
    %26 = vector.extract_strided_slice %8 {offsets = [0, 3], sizes = [4, 1], strides = [1, 1]} : vector<4x8xf32> to vector<4x1xf32>
    %27 = vector.extract_strided_slice %7 {offsets = [3, 0], sizes = [1, 128], strides = [1, 1]} : vector<8x128xf32> to vector<1x128xf32>
    %28 = vector.broadcast %26 : vector<4x1xf32> to vector<4x128xf32>
    %29 = vector.broadcast %27 : vector<1x128xf32> to vector<4x128xf32>
    %30 = arith.mulf %28, %29 : vector<4x128xf32>
    %31 = arith.addf %25, %30 : vector<4x128xf32>
    %32 = vector.extract_strided_slice %8 {offsets = [0, 4], sizes = [4, 1], strides = [1, 1]} : vector<4x8xf32> to vector<4x1xf32>
    %33 = vector.extract_strided_slice %7 {offsets = [4, 0], sizes = [1, 128], strides = [1, 1]} : vector<8x128xf32> to vector<1x128xf32>
    %34 = vector.broadcast %32 : vector<4x1xf32> to vector<4x128xf32>
    %35 = vector.broadcast %33 : vector<1x128xf32> to vector<4x128xf32>
    %36 = arith.mulf %34, %35 : vector<4x128xf32>
    %37 = arith.addf %31, %36 : vector<4x128xf32>
    %38 = vector.extract_strided_slice %8 {offsets = [0, 5], sizes = [4, 1], strides = [1, 1]} : vector<4x8xf32> to vector<4x1xf32>
    %39 = vector.extract_strided_slice %7 {offsets = [5, 0], sizes = [1, 128], strides = [1, 1]} : vector<8x128xf32> to vector<1x128xf32>
    %40 = vector.broadcast %38 : vector<4x1xf32> to vector<4x128xf32>
    %41 = vector.broadcast %39 : vector<1x128xf32> to vector<4x128xf32>
    %42 = arith.mulf %40, %41 : vector<4x128xf32>
    %43 = arith.addf %37, %42 : vector<4x128xf32>
    %44 = vector.extract_strided_slice %8 {offsets = [0, 6], sizes = [4, 1], strides = [1, 1]} : vector<4x8xf32> to vector<4x1xf32>
    %45 = vector.extract_strided_slice %7 {offsets = [6, 0], sizes = [1, 128], strides = [1, 1]} : vector<8x128xf32> to vector<1x128xf32>
    %46 = vector.broadcast %44 : vector<4x1xf32> to vector<4x128xf32>
    %47 = vector.broadcast %45 : vector<1x128xf32> to vector<4x128xf32>
    %48 = arith.mulf %46, %47 : vector<4x128xf32>
    %49 = arith.addf %43, %48 : vector<4x128xf32>
    %50 = vector.extract_strided_slice %8 {offsets = [0, 7], sizes = [4, 1], strides = [1, 1]} : vector<4x8xf32> to vector<4x1xf32>
    %51 = vector.extract_strided_slice %7 {offsets = [7, 0], sizes = [1, 128], strides = [1, 1]} : vector<8x128xf32> to vector<1x128xf32>
    %52 = vector.broadcast %50 : vector<4x1xf32> to vector<4x128xf32>
    %53 = vector.broadcast %51 : vector<1x128xf32> to vector<4x128xf32>
    %54 = arith.mulf %52, %53 : vector<4x128xf32>
    %55 = arith.addf %49, %54 : vector<4x128xf32>
    %c0_8 = arith.constant 0 : index
    %c0_9 = arith.constant 0 : index
    %56 = vector.load %arg5[%c0_8, %c0_9] : memref<4x1xf32, #tpu.memory_space<vmem>>, vector<4x1xf32>
    %57 = vector.broadcast %56 : vector<4x1xf32> to vector<4x128xf32>
    %58 = arith.addf %55, %57 : vector<4x128xf32>
    %cst_10 = arith.constant 0.000000e+00 : f32
    %59 = vector.broadcast %cst_10 : f32 to vector<4x128xf32>
    %60 = arith.maximumf %58, %59 : vector<4x128xf32>
    %c0_11 = arith.constant 0 : index
    %c0_12 = arith.constant 0 : index
    %61 = vector.load %arg6[%c0_11, %c0_12] : memref<2x4xf32, #tpu.memory_space<vmem>>, vector<2x4xf32>
    %62 = vector.extract_strided_slice %61 {offsets = [0, 0], sizes = [2, 1], strides = [1, 1]} : vector<2x4xf32> to vector<2x1xf32>
    %63 = vector.extract_strided_slice %60 {offsets = [0, 0], sizes = [1, 128], strides = [1, 1]} : vector<4x128xf32> to vector<1x128xf32>
    %64 = vector.broadcast %62 : vector<2x1xf32> to vector<2x128xf32>
    %65 = vector.broadcast %63 : vector<1x128xf32> to vector<2x128xf32>
    %66 = arith.mulf %64, %65 : vector<2x128xf32>
    %67 = vector.extract_strided_slice %61 {offsets = [0, 1], sizes = [2, 1], strides = [1, 1]} : vector<2x4xf32> to vector<2x1xf32>
    %68 = vector.extract_strided_slice %60 {offsets = [1, 0], sizes = [1, 128], strides = [1, 1]} : vector<4x128xf32> to vector<1x128xf32>
    %69 = vector.broadcast %67 : vector<2x1xf32> to vector<2x128xf32>
    %70 = vector.broadcast %68 : vector<1x128xf32> to vector<2x128xf32>
    %71 = arith.mulf %69, %70 : vector<2x128xf32>
    %72 = arith.addf %66, %71 : vector<2x128xf32>
    %73 = vector.extract_strided_slice %61 {offsets = [0, 2], sizes = [2, 1], strides = [1, 1]} : vector<2x4xf32> to vector<2x1xf32>
    %74 = vector.extract_strided_slice %60 {offsets = [2, 0], sizes = [1, 128], strides = [1, 1]} : vector<4x128xf32> to vector<1x128xf32>
    %75 = vector.broadcast %73 : vector<2x1xf32> to vector<2x128xf32>
    %76 = vector.broadcast %74 : vector<1x128xf32> to vector<2x128xf32>
    %77 = arith.mulf %75, %76 : vector<2x128xf32>
    %78 = arith.addf %72, %77 : vector<2x128xf32>
    %79 = vector.extract_strided_slice %61 {offsets = [0, 3], sizes = [2, 1], strides = [1, 1]} : vector<2x4xf32> to vector<2x1xf32>
    %80 = vector.extract_strided_slice %60 {offsets = [3, 0], sizes = [1, 128], strides = [1, 1]} : vector<4x128xf32> to vector<1x128xf32>
    %81 = vector.broadcast %79 : vector<2x1xf32> to vector<2x128xf32>
    %82 = vector.broadcast %80 : vector<1x128xf32> to vector<2x128xf32>
    %83 = arith.mulf %81, %82 : vector<2x128xf32>
    %84 = arith.addf %78, %83 : vector<2x128xf32>
    %c0_13 = arith.constant 0 : index
    %c0_14 = arith.constant 0 : index
    %85 = vector.load %arg7[%c0_13, %c0_14] : memref<2x1xf32, #tpu.memory_space<vmem>>, vector<2x1xf32>
    %86 = vector.broadcast %85 : vector<2x1xf32> to vector<2x128xf32>
    %87 = arith.addf %84, %86 : vector<2x128xf32>
    %c0_15 = arith.constant 0 : index
    %c0_16 = arith.constant 0 : index
    %88 = vector.load %arg8[%c0_15, %c0_16] : memref<2x128xf32, #tpu.memory_space<vmem>>, vector<2x128xf32>
    tpu.vector_store %arg8[%c0_15, %c0_16], %87 {strides = array<i32>} : memref<2x128xf32, #tpu.memory_space<vmem>>, vector<2x128xf32>,
    return
  }
  func.func @transform_0(%arg0: i32) -> (i32, i32) {
    %c0_i32 = arith.constant 0 : i32
    %c0_i32_0 = arith.constant 0 : i32
    return %arg0, %c0_i32 : i32, i32
  }
  func.func @transform_1(%arg0: i32) -> (i32, i32) {
    %c0_i32 = arith.constant 0 : i32
    %c0_i32_0 = arith.constant 0 : i32
    %c0_i32_1 = arith.constant 0 : i32
    return %c0_i32, %c0_i32_0 : i32, i32
  }
  func.func @transform_2(%arg0: i32) -> (i32, i32) {
    %c0_i32 = arith.constant 0 : i32
    %c0_i32_0 = arith.constant 0 : i32
    %c0_i32_1 = arith.constant 0 : i32
    return %c0_i32, %c0_i32_0 : i32, i32
  }
  func.func @transform_3(%arg0: i32) -> (i32, i32) {
    %c0_i32 = arith.constant 0 : i32
    %c0_i32_0 = arith.constant 0 : i32
    %c0_i32_1 = arith.constant 0 : i32
    return %c0_i32, %c0_i32_0 : i32, i32
  }
  func.func @transform_4(%arg0: i32) -> (i32, i32) {
    %c0_i32 = arith.constant 0 : i32
    %c0_i32_0 = arith.constant 0 : i32
    %c0_i32_1 = arith.constant 0 : i32
    return %c0_i32, %c0_i32_0 : i32, i32
  }
  func.func @transform_5(%arg0: i32) -> (i32, i32) {
    %c0_i32 = arith.constant 0 : i32
    %c0_i32_0 = arith.constant 0 : i32
    %c0_i32_1 = arith.constant 0 : i32
    return %c0_i32, %c0_i32_0 : i32, i32
  }
  func.func @transform_6(%arg0: i32) -> (i32, i32) {
    %c0_i32 = arith.constant 0 : i32
    %c0_i32_0 = arith.constant 0 : i32
    %c0_i32_1 = arith.constant 0 : i32
    return %c0_i32, %c0_i32_0 : i32, i32
  }
  func.func @transform_7(%arg0: i32) -> (i32, i32) {
    %c0_i32 = arith.constant 0 : i32
    %c0_i32_0 = arith.constant 0 : i32
    return %c0_i32, %arg0 : i32, i32
  }
}

</mosaic_0001>

<bundles_post_ra>
// kernel: intrusion_nn_forward.1
= control target key start
LH: loop header
LB: loop body
LE: loop exit
PB: predicated region body
PF: predicated region fallthrough
CT: control target
= control target key end

     0   :  { %12 = vsyncpa [#allocation3], 0  ;;  %s486_s0 = inlined_call_operand.vmem [shape: f32[8,32], index: 0, kind: input, shape index: {}]   ;;  %s487_s1 = inlined_call_operand.hbm [shape: f32[8,32], index: 1, kind: input, shape index: {}]   ;;  %s488_s2 = inlined_call_operand.vmem [shape: f32[8,1], index: 2, kind: input, shape index: {}]   ;;  %s489_s3 = inlined_call_operand.vmem [shape: f32[4,8], index: 3, kind: input, shape index: {}]   ;;  %s490_s4 = inlined_call_operand.vmem [shape: f32[4,1], index: 4, kind: input, shape index: {}]   ;;  %s491_s5 = inlined_call_operand.vmem [shape: f32[2,4], index: 5, kind: input, shape index: {}]   ;;  %s492_s6 = inlined_call_operand.vmem [shape: f32[2,1], index: 6, kind: input, shape index: {}]   ;;  %s493_s7 = inlined_call_operand.hbm [shape: f32[2,8], index: 7, kind: output, shape index: {}]  }
   0x1   :  { %13 = vsyncpa [#allocation4], 0  ;;  %s21_s26 = sshll.u32 %s487_s1, 4  ;;  %s350_s27 = smov [#allocation2]   ;;  %s22_s26 = int_to_ptr.hbm [resolvable:$true] %s21_s26 }
   0x2   :  { %s23_s28 = sshll.u32 %s350_s27, 4  ;;  %s24_s28 = int_to_ptr.vmem [resolvable:$true] %s23_s28 }
   0x3   :  { %26 = dma.hbm_to_vmem [thread:$0]  %s22_s26, 128, %s24_s28, [#allocation3]  }
   0x4   :  { %346 = dma.done.wait [#allocation3], 128  }
   0x5   :  { %347 = vsyncadd [#allocation3], 4294967168  ;;  %vm64_vm0 = vcmask 261120   ;;  %v56_v0 = vld [vmem:[%s486_s0 + $0x78] sm:$0xff]  ;;  %v55_v1 = vld [vmem:[%s486_s0 + $0x70] sm:$0xff]  ;;  %v351_v11 = vmov 1  }
   0x6   :  { %256 = vmatpush.xpose.msk.msra.mxu0 %vm64_vm0, %v56_v0  ;;  %v54_v2 = vld [vmem:[%s486_s0 + $0x68] sm:$0xff]  ;;  %v53_v3 = vld [vmem:[%s486_s0 + $0x60] sm:$0xff]  ;;  %v52_v4 = vld [vmem:[%s486_s0 + $0x58] sm:$0xff]  ;;  %284 = vset.pattern.permute.xlu1 %v351_v11  ;;  %v352_v12 = vmov 0   ;;  %v353_v13 = vmov 3   ;;  %v354_v16 = vmov 2  }
   0x7   :  { %v51_v5 = vld [vmem:[%s486_s0 + $0x50] sm:$0xff]  ;;  %v50_v6 = vld [vmem:[%s486_s0 + $0x48] sm:$0xff]  ;;  %v49_v7 = vld [vmem:[%s486_s0 + $0x40] sm:$0xff]  ;;  %283 = vset.pattern.permute.xlu0 %v352_v12  ;;  %286 = vset.pattern.permute.xlu2 %v353_v13  ;;  %v355_v18 = vmov 4   ;;  %v356_v20 = vmov 5   ;;  %v357_v21 = vmov 6  }
   0x8   :  { %v137_v8 = vld [vmem:[%s489_s3] sm:$0xf]  ;;  %v48_v10 = vld [vmem:[%s486_s0 + $0x38] sm:$0xff]  ;;  %v47_v14 = vld [vmem:[%s486_s0 + $0x30] sm:$0xff]  ;;  %v358_v23 = vmov 7   ;;  %s246_s21 = sshll.u32 %s493_s7, 4  ;;  %s247_s21 = int_to_ptr.hbm [resolvable:$true] %s246_s21 }
   0x9   :  { %v58_v9 = vld [vmem:[%s488_s2] sm:$0xff]  ;;  %146 = vperm.xlu1 %284, %v137_v8   ;;  %160 = vperm.xlu2 %286, %v137_v8   ;;  %v46_v15 = vld [vmem:[%s486_s0 + $0x28] sm:$0xff]  ;;  %v44_v19 = vld [vmem:[%s486_s0 + $0x18] sm:$0xff] }
   0xa   :  { %257 = vmatpush.xpose.msk.msra.mxu0 %vm64_vm0, %v55_v1  ;;  %61 = vperm.xlu0 %283, %v58_v9   ;;  %v45_v17 = vld [vmem:[%s486_s0 + $0x20] sm:$0xff]  ;;  %v43_v22 = vld [vmem:[%s486_s0 + $0x10] sm:$0xff]  ;;  %v42_v24 = vld [vmem:[%s486_s0 + $0x8] sm:$0xff] }
   0xb   :  { %v194_v25 = vld [vmem:[%s490_s4] sm:$0xf] }
   0xc   :  { %v202_v26 = vld [vmem:[%s491_s5] sm:$0x3] }
   0xd   :  { %v41_v27 = vld [vmem:[%s486_s0] sm:$0xff]  ;;  %s359_s0 = smov [#allocation5]  }
   0xe   :  { %258 = vmatpush.xpose.msk.msra.mxu0 %vm64_vm0, %v54_v2  ;;  %v57_v28 = vld [vmem:[#allocation2] sm:$0xff] }
   0xf   :  { %v231_v29 = vld [vmem:[%s492_s6] sm:$0x3]  ;;  %s244_s6 = sshll.u32 %s359_s0, 4  ;;  %s245_s6 = int_to_ptr.vmem [resolvable:$true] %s244_s6 }
  0x11   :  { %285 = vset.pattern.permute.xlu1 %v354_v16  ;;  %287 = vset.pattern.permute.xlu2 %v355_v18 }
  0x12   :  { %259 = vmatpush.xpose.msk.msra.mxu0 %vm64_vm0, %v53_v3  ;;  %140 = vperm.xlu0 %283, %v137_v8  }
  0x13   :  { %153 = vperm.xlu1 %285, %v137_v8   ;;  %167 = vperm.xlu2 %287, %v137_v8  }
  0x16   :  { %260 = vmatpush.xpose.msk.msra.mxu0 %vm64_vm0, %v52_v4 }
  0x1a   :  { %261 = vmatpush.xpose.msk.msra.mxu0 %vm64_vm0, %v51_v5  ;;  %288 = vset.pattern.permute.xlu0 %v356_v20 }
  0x1b   :  { %289 = vset.pattern.permute.xlu1 %v357_v21  ;;  %174 = vperm.xlu0 %288, %v137_v8  }
  0x1c   :  { %181 = vperm.xlu1 %289, %v137_v8   ;;  %290 = vset.pattern.permute.xlu2 %v358_v23 }
  0x1d   :  { %188 = vperm.xlu2 %290, %v137_v8  }
  0x1e   :  { %262 = vmatpush.xpose.msk.msra.mxu0 %vm64_vm0, %v50_v6 }
  0x22   :  { %263 = vmatpush.xpose.msk.msra.mxu0 %vm64_vm0, %v49_v7 }
  0x23   :  { %293 = vset.pattern.permute.xlu0 %v351_v11 }
  0x24   :  { %291 = vset.pattern.permute.xlu1 %v352_v12  ;;  %211 = vperm.xlu0 %293, %v202_v26  }
  0x25   :  { %197 = vperm.xlu1 %291, %v194_v25   ;;  %292 = vset.pattern.permute.xlu2 %v352_v12 }
  0x26   :  { %264 = vmatpush.xpose.msk.msra.mxu0 %vm64_vm0, %v48_v10  ;;  %205 = vperm.xlu2 %292, %v202_v26  }
  0x2a   :  { %265 = vmatpush.xpose.msk.msra.mxu0 %vm64_vm0, %v47_v14 }
  0x2c   :  { %297 = vset.pattern.permute.xlu0 %v352_v12 }
  0x2d   :  { %294 = vset.pattern.permute.xlu1 %v354_v16 }
  0x2e   :  { %266 = vmatpush.xpose.msk.msra.mxu0 %vm64_vm0, %v46_v15  ;;  %218 = vperm.xlu1 %294, %v202_v26  }
  0x2f   :  { %295 = vset.pattern.permute.xlu2 %v353_v13 }
  0x30   :  { %225 = vperm.xlu2 %295, %v202_v26  }
  0x32   :  { %267 = vmatpush.xpose.msk.msra.mxu0 %vm64_vm0, %v45_v17 }
  0x36   :  { %268 = vmatpush.xpose.msk.msra.mxu0 %vm64_vm0, %v44_v19  ;;  %296 = vset.pattern.permute.xlu1 %v352_v12 }
  0x37   :  { %234 = vperm.xlu1 %296, %v231_v29  }
  0x3a   :  { %269 = vmatpush.xpose.msk.msra.mxu0 %vm64_vm0, %v43_v22 }
  0x3e   :  { %270 = vmatpush.xpose.msk.msra.mxu0 %vm64_vm0, %v42_v24 }
  0x42   :  { %271 = vmatpush.xpose.msk.msra.mxu0 %vm64_vm0, %v41_v27 }
  0x45   :  { %272 = vmatmul.msk.f32.vlgmr.msra.gmra.mxu0 %vm64_vm0, %v57_v28 }
  0x63   :  { %v161_v32 = vpop.permute.xlu2 %160 }
  0x6d   :  { %v168_v37 = vpop.permute.xlu2 %167 }
  0x77   :  { %v189_v52 = vpop.permute.xlu2 %188 }
  0x7b   :  { %v147_v30 = vpop.permute.xlu1 %146 }
  0x7c   :  { %v62_v31 = vpop.permute.xlu0 %61 }
  0x80   :  { %v206_v1 = vpop.permute.xlu2 %205 }
  0x84   :  { %v141_v36 = vpop.permute.xlu0 %140 }
  0x85   :  { %v154_v33 = vpop.permute.xlu1 %153 }
  0x8a   :  { %v226_v13 = vpop.permute.xlu2 %225 }
  0x8d   :  { %v175_v53 = vpop.permute.xlu0 %174 }
  0x8e   :  { %v182_v41 = vpop.permute.xlu1 %181 }
  0x96   :  { %v212_v6 = vpop.permute.xlu0 %211 }
  0x97   :  { %v198_v57 = vpop.permute.xlu1 %197 }
  0xa0   :  { %v219_v4 = vpop.permute.xlu1 %218 }
  0xa9   :  { %v235_v18 = vpop.permute.xlu1 %234 }
  0xc2   :  { %v133_v34 = vpop.f32.mrf.mxu0 }
  0xc3   :  { %v134_v35 = vadd.f32 %v133_v34, %v62_v31 }
  0xc5   :  { %v136_v38 = vmax.f32 %v134_v35, 0.0 }
  0xc7   :  { %v143_v39 = vperm.slane %v136_v38, 0  ;;  %v149_v40 = vperm.slane %v136_v38, 1  ;;  %v156_v42 = vperm.slane %v136_v38, 2  ;;  %v163_v45 = vperm.slane %v136_v38, 3 }
  0xc8   :  { %v170_v48 = vperm.slane %v136_v38, 4  ;;  %v177_v51 = vperm.slane %v136_v38, 5  ;;  %v184_v54 = vperm.slane %v136_v38, 6  ;;  %v191_v58 = vperm.slane %v136_v38, 7 }
  0xc9   :  { %v144_v43 = vmul.f32 %v143_v39, %v141_v36  ;;  %v150_v44 = vmul.f32 %v149_v40, %v147_v30  ;;  %v157_v47 = vmul.f32 %v156_v42, %v154_v33  ;;  %v164_v50 = vmul.f32 %v163_v45, %v161_v32 }
  0xca   :  { %v171_v56 = vmul.f32 %v170_v48, %v168_v37  ;;  %v178_v60 = vmul.f32 %v177_v51, %v175_v53  ;;  %v185_v61 = vmul.f32 %v184_v54, %v182_v41  ;;  %v192_v63 = vmul.f32 %v191_v58, %v189_v52 }
  0xcb   :  { %v151_v46 = vadd.f32 %v150_v44, %v144_v43 }
  0xcd   :  { %v158_v49 = vadd.f32 %v157_v47, %v151_v46 }
  0xcf   :  { %v165_v55 = vadd.f32 %v164_v50, %v158_v49 }
  0xd1   :  { %v172_v59 = vadd.f32 %v171_v56, %v165_v55 }
  0xd3   :  { %v179_v62 = vadd.f32 %v178_v60, %v172_v59 }
  0xd5   :  { %v186_v0 = vadd.f32 %v185_v61, %v179_v62 }
  0xd7   :  { %v193_v2 = vadd.f32 %v192_v63, %v186_v0 }
  0xd9   :  { %v200_v3 = vadd.f32 %v198_v57, %v193_v2 }
  0xdb   :  { %v201_v5 = vmax.f32 %v200_v3, 0.0 }
  0xdd   :  { %v208_v7 = vperm.slane %v201_v5, 0  ;;  %v221_v8 = vperm.slane %v201_v5, 2  ;;  %v214_v9 = vperm.slane %v201_v5, 1  ;;  %v228_v11 = vperm.slane %v201_v5, 3 }
  0xdf   :  { %v209_v10 = vmul.f32 %v208_v7, %v206_v1  ;;  %v215_v12 = vmul.f32 %v214_v9, %v212_v6  ;;  %v222_v14 = vmul.f32 %v221_v8, %v219_v4  ;;  %v229_v16 = vmul.f32 %v228_v11, %v226_v13 }
  0xe1   :  { %v216_v15 = vadd.f32 %v215_v12, %v209_v10 }
  0xe3   :  { %v223_v17 = vadd.f32 %v222_v14, %v216_v15 }
  0xe5   :  { %v230_v19 = vadd.f32 %v229_v16, %v223_v17 }
  0xe7   :  { %v237_v20 = vadd.f32 %v235_v18, %v230_v19 }
  0xe9   :  { %238 = vst [vmem:[#allocation5] sm:$0x3] %v237_v20 }
  0xea   :  { %249 = dma.vmem_to_hbm [thread:$0]  %s245_s6, 32, %s247_s21, [#allocation4]  }
  0xeb   :  { %348 = dma.done.wait [#allocation4], 32  }
  0xec   :  { %349 = vsyncadd [#allocation4], 4294967264 }
  0xed   :  { %254 = vsyncpa [#allocation3], 1 }
  0xee   :  { %255 = vsyncpa [#allocation4], 1 }

</bundles_post_ra>
